<compile_context>
chip_gen: v5e
topology: v5e:2x2
jax: 0.10.0
libtpu: 0.0.40
codegen_flags: <defaults>
</compile_context>

<pallas_src>
import functools
from typing import NamedTuple

import jax
import jax.numpy as jnp
from jax.experimental import pallas as pl
from jax.experimental.pallas import tpu as pltpu

LANE = 128


def _cdiv(a, b):
    return (a + b - 1) // b


def _round_up(x, m):
    return _cdiv(x, m) * m


class _Meta(NamedTuple):
    dims_pad: tuple   # padded feature dims (Din_pad, D1_pad, ..., Dout_pad)
    out_dim: int      # true (unpadded) output width
    k_tile: int       # K tile for the first matmul (streaming path only)
    batch_tile: int   # max rows per batch tile
    resident: bool    # True -> W0 fully resident, grid=(nb,)


# --------------------------------------------------------------------------
# One-time parameter preparation (PyTorch (out,in) -> TPU (in,out), padded,
# bf16).  Done outside the forward pass: no per-call transpose / upcast.
# --------------------------------------------------------------------------
def prepare_classifier_params(weights_oi, biases, *, param_dtype=jnp.bfloat16,
                              k_tile=1024, batch_tile=512,
                              resident_w0_budget_bytes=8 * 1024 * 1024):
    n_layers = len(weights_oi)
    dims = [int(weights_oi[0].shape[1])] + [int(w.shape[0]) for w in weights_oi]

    itemsize = jnp.dtype(param_dtype).itemsize
    din_lane_pad = _round_up(dims[0], LANE)
    d1_pad = _round_up(dims[1], LANE)

    # Residency decision: keep W0 fully in VMEM when it fits the budget.
    resident = din_lane_pad * d1_pad * itemsize <= resident_w0_budget_bytes

    if resident:
        k_tile_eff = din_lane_pad
        din_pad = din_lane_pad
    else:
        k_tile_eff = _round_up(min(int(k_tile), din_lane_pad), LANE)
        din_pad = _round_up(dims[0], k_tile_eff)

    dims_pad = [din_pad] + [_round_up(d, LANE) for d in dims[1:]]

    params = []
    for i in range(n_layers):
        din_i, dout_i = dims[i], dims[i + 1]
        dinp, doutp = dims_pad[i], dims_pad[i + 1]
        w_io = jnp.zeros((dinp, doutp), param_dtype)
        w_io = w_io.at[:din_i, :dout_i].set(
            jnp.asarray(weights_oi[i], jnp.float32).T.astype(param_dtype))
        b_p = jnp.zeros((1, doutp), jnp.float32)
        b_p = b_p.at[0, :dout_i].set(jnp.asarray(biases[i], jnp.float32))
        params.append(w_io)   # (Din_pad, Dout_pad) bf16
        params.append(b_p)    # (1, Dout_pad)       f32

    meta = _Meta(dims_pad=tuple(dims_pad), out_dim=dims[-1],
                 k_tile=int(k_tile_eff), batch_tile=int(batch_tile),
                 resident=bool(resident))
    return tuple(params), meta


# --------------------------------------------------------------------------
# Kernels
# --------------------------------------------------------------------------
def _make_resident_kernel(n_layers, compute_dtype):
    """Whole MLP per batch tile; every weight resident in VMEM."""
    def kernel(*refs):
        x_ref = refs[0]
        param_refs = refs[1:1 + 2 * n_layers]
        out_ref = refs[1 + 2 * n_layers]

        # In-kernel bf16 cast (cheap VPU op, hidden under the x DMA).
        h = x_ref[...].astype(compute_dtype)
        for li in range(n_layers):
            w_ref = param_refs[2 * li]
            b_ref = param_refs[2 * li + 1]
            h = jnp.dot(h, w_ref[...],
                        preferred_element_type=jnp.float32) + b_ref[...]
            if li < n_layers - 1:
                h = jnp.maximum(h, 0.0).astype(compute_dtype)   # ReLU -> bf16
        out_ref[...] = h.astype(out_ref.dtype)

    return kernel


def _make_ktiled_kernel(n_layers, compute_dtype):
    """K-tiled layer 0 with f32 VMEM accumulator; epilogue at the last K step."""
    def kernel(*refs):
        x_ref = refs[0]
        param_refs = refs[1:1 + 2 * n_layers]
        out_ref = refs[1 + 2 * n_layers]
        acc_ref = refs[2 + 2 * n_layers]

        k = pl.program_id(1)

        @pl.when(k == 0)
        def _():
            acc_ref[...] = jnp.zeros_like(acc_ref)

        acc_ref[...] += jnp.dot(x_ref[...].astype(compute_dtype),
                                param_refs[0][...],
                                preferred_element_type=jnp.float32)

        @pl.when(k == pl.num_programs(1) - 1)
        def _():
            h = acc_ref[...] + param_refs[1][...]                # bias0 (f32)
            if n_layers > 1:
                h = jnp.maximum(h, 0.0).astype(compute_dtype)    # ReLU -> bf16
            for li in range(1, n_layers):
                w_ref = param_refs[2 * li]
                b_ref = param_refs[2 * li + 1]
                h = jnp.dot(h, w_ref[...],
                            preferred_element_type=jnp.float32) + b_ref[...]
                if li < n_layers - 1:
                    h = jnp.maximum(h, 0.0).astype(compute_dtype)
            out_ref[...] = h.astype(out_ref.dtype)

    return kernel


# --------------------------------------------------------------------------
# Batch tiling: balanced tiles, nb >= 2 (even) so both v7x cores get work.
# --------------------------------------------------------------------------
def _batch_tiling(B, batch_tile):
    nb = max(2, _cdiv(B, batch_tile))
    if nb % 2:
        nb += 1
    tb = _round_up(_cdiv(B, nb), 16)
    return nb, tb, nb * tb


# --------------------------------------------------------------------------
# Forward pass (jitted).  meta is static; params are the prepared arrays.
# --------------------------------------------------------------------------
@functools.partial(jax.jit, static_argnums=(2,))
def classifier_dense_forward(x_nchw, params, meta):
    B = int(x_nchw.shape[0])
    n_layers = len(params) // 2
    dims_pad = meta.dims_pad
    din_pad, dout_pad = dims_pad[0], dims_pad[-1]

    # torch.nn.Flatten (row-major over C,H,W).  Keep x in its original dtype;
    # the bf16 cast happens inside the kernel.
    x = x_nchw.reshape(B, -1)
    din = int(x.shape[1])
    x_item = x.dtype.itemsize

    nb, tb, b_pad = _batch_tiling(B, meta.batch_tile)
    if b_pad != B or din_pad != din:
        x = jnp.pad(x, ((0, b_pad - B), (0, din_pad - din)))

    param_bytes = sum(int(p.size) * p.dtype.itemsize for p in params)
    out_bytes = b_pad * dout_pad * 4
    flops = 2 * b_pad * sum(dims_pad[i] * dims_pad[i + 1] for i in range(n_layers))
    max_hidden = max(dims_pad[1:])

    if meta.resident:
        grid = (nb,)
        in_specs = [pl.BlockSpec((tb, din_pad), lambda i: (i, 0))]      # x tile
        for li in range(n_layers):                                      # all layers resident
            in_specs.append(pl.BlockSpec((dims_pad[li], dims_pad[li + 1]),
                                         lambda i: (0, 0)))
            in_specs.append(pl.BlockSpec((1, dims_pad[li + 1]), lambda i: (0, 0)))
        out_specs = pl.BlockSpec((tb, dout_pad), lambda i: (i, 0))
        scratch_shapes = []
        kernel = _make_resident_kernel(n_layers, jnp.bfloat16)
        dim_sem = ("parallel",)
        bytes_accessed = b_pad * din_pad * x_item + param_bytes + out_bytes
        tile_bytes = tb * din_pad * x_item + tb * dout_pad * 4 + param_bytes
        needed = 2 * tile_bytes + tb * max_hidden * 4
    else:
        tk = meta.k_tile
        nk = din_pad // tk
        grid = (nb, nk)
        in_specs = [pl.BlockSpec((tb, tk), lambda i, k: (i, k)),            # x tile
                    pl.BlockSpec((tk, dims_pad[1]), lambda i, k: (k, 0)),   # W0 (K-tiled)
                    pl.BlockSpec((1, dims_pad[1]), lambda i, k: (0, 0))]    # b0
        for li in range(1, n_layers):                                       # later layers resident
            in_specs.append(pl.BlockSpec((dims_pad[li], dims_pad[li + 1]),
                                         lambda i, k: (0, 0)))
            in_specs.append(pl.BlockSpec((1, dims_pad[li + 1]), lambda i, k: (0, 0)))
        out_specs = pl.BlockSpec((tb, dout_pad), lambda i, k: (i, 0))
        scratch_shapes = [pltpu.VMEM((tb, dims_pad[1]), jnp.float32)]
        kernel = _make_ktiled_kernel(n_layers, jnp.bfloat16)
        dim_sem = ("parallel", "arbitrary")
        w0_bytes = int(params[0].size) * params[0].dtype.itemsize
        # W0 is re-streamed once per batch tile on this path.
        bytes_accessed = (b_pad * din_pad * x_item + nb * w0_bytes
                          + (param_bytes - w0_bytes) + out_bytes)
        tile_bytes = (tb * tk * x_item + tk * dims_pad[1] * 2
                      + tb * dout_pad * 4 + (param_bytes - w0_bytes))
        needed = 2 * tile_bytes + tb * dims_pad[1] * 4 + tb * max_hidden * 4

    # VMEM limit from the actual tiles (double-buffered) plus headroom —
    # well under v7x's 64 MiB physical VMEM for typical classifier heads.
    vmem_limit = max(int(needed * 1.5) + (2 << 20), 8 << 20)

    out = pl.pallas_call(
        kernel,
        out_shape=jax.ShapeDtypeStruct((b_pad, dout_pad), jnp.float32),
        grid=grid,
        in_specs=in_specs,
        out_specs=out_specs,
        scratch_shapes=scratch_shapes,
        compiler_params=pltpu.CompilerParams(
            dimension_semantics=dim_sem,
            vmem_limit_bytes=vmem_limit),
        cost_estimate=pl.CostEstimate(flops=flops, transcendentals=0,
                                      bytes_accessed=int(bytes_accessed)),
    )(x, *params)

    return out[:B, :meta.out_dim]


# --------------------------------------------------------------------------
# Helpers for the example / self-check.
# --------------------------------------------------------------------------
def _init_linear_params(key, dims):
    """PyTorch-Linear-style init: U(-1/sqrt(fan_in), +1/sqrt(fan_in))."""
    weights, biases = [], []
    for i in range(len(dims) - 1):
        fan_in, fan_out = dims[i], dims[i + 1]
        key, kw, kb = jax.random.split(key, 3)
        bound = 1.0 / (fan_in ** 0.5)
        weights.append(jax.random.uniform(kw, (fan_out, fan_in), jnp.float32,
                                          -bound, bound))
        biases.append(jax.random.uniform(kb, (fan_out,), jnp.float32,
                                         -bound, bound))
    return weights, biases


def _reference_forward(x_nchw, weights_oi, biases, compute_dtype=jnp.bfloat16):
    """Pure-JAX reference mimicking the kernel's bf16-in / f32-accumulate math."""
    h = x_nchw.reshape(x_nchw.shape[0], -1)
    n = len(weights_oi)
    for i in range(n):
        w = jnp.asarray(weights_oi[i], jnp.float32).T.astype(compute_dtype)
        h = jnp.dot(h.astype(compute_dtype), w,
                    preferred_element_type=jnp.float32)
        h = h + jnp.asarray(biases[i], jnp.float32)
        if i < n - 1:
            h = jnp.maximum(h, 0.0)
    return h


if __name__ == "__main__":
    key = jax.random.PRNGKey(0)

    # Small example consistent with the module: NCHW input, flattened feature
    # dim equals dims[0].  activation_type = ReLU, depth = 3 linear layers.
    B, C, H, W = 2, 4, 16, 16
    dims = [C * H * W, 64, 32, 10]

    key, kx = jax.random.split(key)
    x = jax.random.normal(kx, (B, C, H, W), jnp.float32)
    weights, biases = _init_linear_params(key, dims)
    ref = _reference_forward(x, weights, biases)

    # Path 1 (default): W0 fully resident, single "parallel" batch grid axis.
    params, meta = prepare_classifier_params(weights, biases)
    out = jax.block_until_ready(classifier_dense_forward(x, params, meta))
    assert out.shape == (B, dims[-1])
    assert jnp.allclose(out, ref, atol=1e-2, rtol=1e-2), (
        f"resident path max abs err {jnp.max(jnp.abs(out - ref))}")

    # Path 2 (forced): K-tiled streaming-W0 fallback, exercised for coverage.
    params2, meta2 = prepare_classifier_params(weights, biases,
                                               resident_w0_budget_bytes=0,
                                               k_tile=256)
    out2 = jax.block_until_ready(classifier_dense_forward(x, params2, meta2))
    assert out2.shape == (B, dims[-1])
    assert jnp.allclose(out2, ref, atol=1e-2, rtol=1e-2), (
        f"k-tiled path max abs err {jnp.max(jnp.abs(out2 - ref))}")

    print("KERNEL_OK")
</pallas_src>

<mosaic_0001>
module attributes {stable_mosaic.version = 11 : i64} {
  func.func @kernel(%arg0: i32, %arg1: memref<16x1024xf32, #tpu.memory_space<vmem>>, %arg2: memref<1024x128xbf16, #tpu.memory_space<vmem>>, %arg3: memref<1x128xf32, #tpu.memory_space<vmem>>, %arg4: memref<128x128xbf16, #tpu.memory_space<vmem>>, %arg5: memref<1x128xf32, #tpu.memory_space<vmem>>, %arg6: memref<128x128xbf16, #tpu.memory_space<vmem>>, %arg7: memref<1x128xf32, #tpu.memory_space<vmem>>, %arg8: memref<16x128xf32, #tpu.memory_space<vmem>>) attributes {dimension_semantics = [#tpu.dimension_semantics<parallel>], iteration_bounds = array<i64: 2>, scalar_prefetch = 0 : i64, scratch_operands = 0 : i64, tpu.core_type = #tpu.core_type<tc>, window_params = [{transform_indices = @transform_0, window_bounds = array<i64: 16, 1024>}, {pipeline_mode = #tpu.pipeline_mode<synchronous>, transform_indices = @transform_1, window_bounds = array<i64: 1024, 128>}, {pipeline_mode = #tpu.pipeline_mode<synchronous>, transform_indices = @transform_2, window_bounds = array<i64: 1, 128>}, {pipeline_mode = #tpu.pipeline_mode<synchronous>, transform_indices = @transform_3, window_bounds = array<i64: 128, 128>}, {pipeline_mode = #tpu.pipeline_mode<synchronous>, transform_indices = @transform_4, window_bounds = array<i64: 1, 128>}, {pipeline_mode = #tpu.pipeline_mode<synchronous>, transform_indices = @transform_5, window_bounds = array<i64: 128, 128>}, {pipeline_mode = #tpu.pipeline_mode<synchronous>, transform_indices = @transform_6, window_bounds = array<i64: 1, 128>}, {transform_indices = @transform_7, window_bounds = array<i64: 16, 128>}]} {
    %c0 = arith.constant 0 : index
    %c0_0 = arith.constant 0 : index
    %0 = vector.load %arg1[%c0, %c0_0] : memref<16x1024xf32, #tpu.memory_space<vmem>>, vector<16x1024xf32>
    %1 = arith.truncf %0 : vector<16x1024xf32> to vector<16x1024xbf16>
    %c0_1 = arith.constant 0 : index
    %c0_2 = arith.constant 0 : index
    %2 = vector.load %arg2[%c0_1, %c0_2] : memref<1024x128xbf16, #tpu.memory_space<vmem>>, vector<1024x128xbf16>
    %cst = arith.constant dense<0.000000e+00> : vector<16x128xf32>
    %3 = tpu.matmul %1, %2, %cst {dimension_numbers = #tpu.dot_dimension_numbers<[1], [0], [0], [1], [0, 0, 1, 1], [], []>} : vector<16x1024xbf16>, vector<1024x128xbf16>, vector<16x128xf32> -> vector<16x128xf32>
    %c0_3 = arith.constant 0 : index
    %c0_4 = arith.constant 0 : index
    %4 = vector.load %arg3[%c0_3, %c0_4] : memref<1x128xf32, #tpu.memory_space<vmem>>, vector<1x128xf32>
    %5 = vector.broadcast %4 : vector<1x128xf32> to vector<16x128xf32>
    %6 = arith.addf %3, %5 : vector<16x128xf32>
    %cst_5 = arith.constant 0.000000e+00 : f32
    %7 = vector.broadcast %cst_5 : f32 to vector<16x128xf32>
    %8 = arith.maximumf %6, %7 : vector<16x128xf32>
    %9 = arith.truncf %8 : vector<16x128xf32> to vector<16x128xbf16>
    %c0_6 = arith.constant 0 : index
    %c0_7 = arith.constant 0 : index
    %10 = vector.load %arg4[%c0_6, %c0_7] : memref<128x128xbf16, #tpu.memory_space<vmem>>, vector<128x128xbf16>
    %cst_8 = arith.constant dense<0.000000e+00> : vector<16x128xf32>
    %11 = tpu.matmul %9, %10, %cst_8 {dimension_numbers = #tpu.dot_dimension_numbers<[1], [0], [0], [1], [0, 0, 1, 1], [], []>} : vector<16x128xbf16>, vector<128x128xbf16>, vector<16x128xf32> -> vector<16x128xf32>
    %c0_9 = arith.constant 0 : index
    %c0_10 = arith.constant 0 : index
    %12 = vector.load %arg5[%c0_9, %c0_10] : memref<1x128xf32, #tpu.memory_space<vmem>>, vector<1x128xf32>
    %13 = vector.broadcast %12 : vector<1x128xf32> to vector<16x128xf32>
    %14 = arith.addf %11, %13 : vector<16x128xf32>
    %cst_11 = arith.constant 0.000000e+00 : f32
    %15 = vector.broadcast %cst_11 : f32 to vector<16x128xf32>
    %16 = arith.maximumf %14, %15 : vector<16x128xf32>
    %17 = arith.truncf %16 : vector<16x128xf32> to vector<16x128xbf16>
    %c0_12 = arith.constant 0 : index
    %c0_13 = arith.constant 0 : index
    %18 = vector.load %arg6[%c0_12, %c0_13] : memref<128x128xbf16, #tpu.memory_space<vmem>>, vector<128x128xbf16>
    %cst_14 = arith.constant dense<0.000000e+00> : vector<16x128xf32>
    %19 = tpu.matmul %17, %18, %cst_14 {dimension_numbers = #tpu.dot_dimension_numbers<[1], [0], [0], [1], [0, 0, 1, 1], [], []>} : vector<16x128xbf16>, vector<128x128xbf16>, vector<16x128xf32> -> vector<16x128xf32>
    %c0_15 = arith.constant 0 : index
    %c0_16 = arith.constant 0 : index
    %20 = vector.load %arg7[%c0_15, %c0_16] : memref<1x128xf32, #tpu.memory_space<vmem>>, vector<1x128xf32>
    %21 = vector.broadcast %20 : vector<1x128xf32> to vector<16x128xf32>
    %22 = arith.addf %19, %21 : vector<16x128xf32>
    %c0_17 = arith.constant 0 : index
    %c0_18 = arith.constant 0 : index
    %23 = vector.load %arg8[%c0_17, %c0_18] : memref<16x128xf32, #tpu.memory_space<vmem>>, vector<16x128xf32>
    tpu.vector_store %arg8[%c0_17, %c0_18], %22 {strides = array<i32>} : memref<16x128xf32, #tpu.memory_space<vmem>>, vector<16x128xf32>,
    return
  }
  func.func @transform_0(%arg0: i32) -> (i32, i32) {
    %c0_i32 = arith.constant 0 : i32
    %c0_i32_0 = arith.constant 0 : i32
    return %arg0, %c0_i32 : i32, i32
  }
  func.func @transform_1(%arg0: i32) -> (i32, i32) {
    %c0_i32 = arith.constant 0 : i32
    %c0_i32_0 = arith.constant 0 : i32
    %c0_i32_1 = arith.constant 0 : i32
    return %c0_i32, %c0_i32_0 : i32, i32
  }
  func.func @transform_2(%arg0: i32) -> (i32, i32) {
    %c0_i32 = arith.constant 0 : i32
    %c0_i32_0 = arith.constant 0 : i32
    %c0_i32_1 = arith.constant 0 : i32
    return %c0_i32, %c0_i32_0 : i32, i32
  }
  func.func @transform_3(%arg0: i32) -> (i32, i32) {
    %c0_i32 = arith.constant 0 : i32
    %c0_i32_0 = arith.constant 0 : i32
    %c0_i32_1 = arith.constant 0 : i32
    return %c0_i32, %c0_i32_0 : i32, i32
  }
  func.func @transform_4(%arg0: i32) -> (i32, i32) {
    %c0_i32 = arith.constant 0 : i32
    %c0_i32_0 = arith.constant 0 : i32
    %c0_i32_1 = arith.constant 0 : i32
    return %c0_i32, %c0_i32_0 : i32, i32
  }
  func.func @transform_5(%arg0: i32) -> (i32, i32) {
    %c0_i32 = arith.constant 0 : i32
    %c0_i32_0 = arith.constant 0 : i32
    %c0_i32_1 = arith.constant 0 : i32
    return %c0_i32, %c0_i32_0 : i32, i32
  }
  func.func @transform_6(%arg0: i32) -> (i32, i32) {
    %c0_i32 = arith.constant 0 : i32
    %c0_i32_0 = arith.constant 0 : i32
    %c0_i32_1 = arith.constant 0 : i32
    return %c0_i32, %c0_i32_0 : i32, i32
  }
  func.func @transform_7(%arg0: i32) -> (i32, i32) {
    %c0_i32 = arith.constant 0 : i32
    %c0_i32_0 = arith.constant 0 : i32
    return %arg0, %c0_i32 : i32, i32
  }
}

</mosaic_0001>

<bundles_post_ra>
// kernel: classifier_dense_forward.1
= control target key start
LH: loop header
LB: loop body
LE: loop exit
PB: predicated region body
PF: predicated region fallthrough
CT: control target
= control target key end

     0   :  { %12 = vsyncpa [#allocation3], 0  ;;  %s1718_s24 = smov 0   ;;  %s1821_s0 = inlined_call_operand.vmem [shape: f32[32,1024], index: 0, kind: input, shape index: {}]   ;;  %s1822_s1 = inlined_call_operand.hbm [shape: bf16[1024,128], index: 1, kind: input, shape index: {}]   ;;  %s1823_s2 = inlined_call_operand.vmem [shape: f32[1,128], index: 2, kind: input, shape index: {}]   ;;  %s1824_s3 = inlined_call_operand.vmem [shape: bf16[128,128], index: 3, kind: input, shape index: {}]   ;;  %s1825_s4 = inlined_call_operand.vmem [shape: f32[1,128], index: 4, kind: input, shape index: {}]   ;;  %s1826_s5 = inlined_call_operand.vmem [shape: bf16[128,128], index: 5, kind: input, shape index: {}]   ;;  %s1827_s6 = inlined_call_operand.vmem [shape: f32[1,128], index: 6, kind: input, shape index: {}]   ;;  %s1828_s7 = inlined_call_operand.vmem [shape: f32[32,128], index: 7, kind: output, shape index: {}]  }
   0x1 LB: > { %s212_s27 = sshll.u32 %s1822_s1, 4  ;;  %s1194_s28 = sadd.s32 4294967295, %s1673_s24   ;;  %s1673_s24 = sphi %s1718_s24, %s18_s24   ;;  %s213_s27 = int_to_ptr.hbm [resolvable:$true] %s212_s27 }
   0x2   : > { %p1196_p0 = scmp.ge.s32.totalorder %s1673_s24, 1  ;;  %p201_p1 = scmp.lt.s32.totalorder %s1673_s24, 3 }
   0x3   : > { %p1617_p2 = scmp.eq.s32.totalorder %s1194_s28, 0  ;;  %s1675_s29 = smov [#allocation2]  }
   0x4   : > { %p202_p3 = pnand %p1196_p0, %p201_p1  ;;  %s214_s30 = sshll.u32 %s1675_s29, 4  ;;  %s215_s30 = int_to_ptr.vmem [resolvable:$true] %s214_s30 }
   0x5   : > { %s1676_s8 = smov 64   ;;  %s1677_s9 = smov 4  }
   0x6   : > { %p1613_p4 = pneg %p202_p3  ;;  %255 = sbr.rel (%p202_p3) target bundleno = 503 (0x1f7), region = 48 }
   0x8   : > { %p1614_p5 = pnand %p1617_p2, %p1613_p4 }
   0xa   : > { %1616 = dma.hbm_to_vmem [thread:$0]  (!%p1614_p5), %s213_s27, 8192, %s215_s30, [#allocation3], %s1676_s8, %s1676_s8, %s1677_s9  }
   0xb   : > { %1668 = dma.done.wait (%p1617_p2), [#allocation3], 8192  }
   0xc   : > { %1670 = vsyncadd (%p1617_p2), [#allocation3], 4294959104  ;;  %v1536_v0 = vld [vmem:[#allocation2 + $0x38] sm:$0xff]  ;;  %v1535_v4 = vld [vmem:[#allocation2 + $0x30] sm:$0xff]  ;;  %s1201_s10 = sshll.u32 %s1194_s28, 1 }
   0xd   : > { %v1544_v1 = vld [vmem:[#allocation2 + $0x78] sm:$0xff]  ;;  %842 = vmatpush.bf16.msra.mxu0 %v1536_v0  ;;  %v1543_v5 = vld [vmem:[#allocation2 + $0x70] sm:$0xff]  ;;  %v1534_v8 = vld [vmem:[#allocation2 + $0x28] sm:$0xff]  ;;  %p290_p6 = scmp.lt.s32.totalorder %s1201_s10, 3 }
   0xe   : > { %v1552_v2 = vld [vmem:[#allocation2 + $0xb8] sm:$0xff]  ;;  %856 = vmatpush.bf16.msra.mxu1 %v1544_v1  ;;  %v1551_v6 = vld [vmem:[#allocation2 + $0xb0] sm:$0xff]  ;;  %v1542_v9 = vld [vmem:[#allocation2 + $0x68] sm:$0xff] }
   0xf   : > { %v1560_v3 = vld [vmem:[#allocation2 + $0xf8] sm:$0xff]  ;;  %870 = vmatpush.bf16.msra.mxu2 %v1552_v2  ;;  %v1559_v7 = vld [vmem:[#allocation2 + $0xf0] sm:$0xff]  ;;  %v1550_v10 = vld [vmem:[#allocation2 + $0xa8] sm:$0xff]  ;;  %s1830_s10 = smov (!%p290_p6, %s1201_s10), 3 }
  0x10   : > { %884 = vmatpush.bf16.msra.mxu3 %v1560_v3  ;;  %v1558_v11 = vld [vmem:[#allocation2 + $0xe8] sm:$0xff]  ;;  %v1533_v12 = vld [vmem:[#allocation2 + $0x20] sm:$0xff]  ;;  %v1532_v16 = vld [vmem:[#allocation2 + $0x18] sm:$0xff]  ;;  %s1528_s11 = sshll.u32 %s1830_s10, 6  ;;  %s1205_s8 = sshll.u32 %s1830_s10, 3 }
  0x11   : > { %843 = vmatpush.bf16.msra.mxu0 %v1535_v4  ;;  %v1541_v13 = vld [vmem:[#allocation2 + $0x60] sm:$0xff]  ;;  %v1540_v17 = vld [vmem:[#allocation2 + $0x58] sm:$0xff]  ;;  %v1531_v20 = vld [vmem:[#allocation2 + $0x10] sm:$0xff]  ;;  %s1739_s14 = scalar_lea.vmem %s1821_s0, %s1528_s11 }
  0x12   : > { %857 = vmatpush.bf16.msra.mxu1 %v1543_v5  ;;  %v1549_v14 = vld [vmem:[#allocation2 + $0xa0] sm:$0xff]  ;;  %v1548_v18 = vld [vmem:[#allocation2 + $0x98] sm:$0xff]  ;;  %v1539_v21 = vld [vmem:[#allocation2 + $0x50] sm:$0xff] }
  0x13   : > { %871 = vmatpush.bf16.msra.mxu2 %v1551_v6  ;;  %v1557_v15 = vld [vmem:[#allocation2 + $0xe0] sm:$0xff]  ;;  %v1556_v19 = vld [vmem:[#allocation2 + $0xd8] sm:$0xff]  ;;  %v1547_v22 = vld [vmem:[#allocation2 + $0x90] sm:$0xff] }
  0x14   : > { %885 = vmatpush.bf16.msra.mxu3 %v1559_v7  ;;  %v1555_v23 = vld [vmem:[#allocation2 + $0xd0] sm:$0xff]  ;;  %v1530_v24 = vld [vmem:[#allocation2 + $0x8] sm:$0xff]  ;;  %v1529_v28 = vld [vmem:[#allocation2] sm:$0xff] }
  0x15   : > { %844 = vmatpush.bf16.msra.mxu0 %v1534_v8  ;;  %v1538_v25 = vld [vmem:[#allocation2 + $0x48] sm:$0xff]  ;;  %v1537_v29 = vld [vmem:[#allocation2 + $0x40] sm:$0xff]  ;;  %v1568_v32 = vld [vmem:[#allocation2 + $0x138] sm:$0xff] }
  0x16   : > { %858 = vmatpush.bf16.msra.mxu1 %v1542_v9  ;;  %v1546_v26 = vld [vmem:[#allocation2 + $0x88] sm:$0xff]  ;;  %v1545_v30 = vld [vmem:[#allocation2 + $0x80] sm:$0xff]  ;;  %v1576_v33 = vld [vmem:[#allocation2 + $0x178] sm:$0xff] }
  0x17   : > { %872 = vmatpush.bf16.msra.mxu2 %v1550_v10  ;;  %v1554_v27 = vld [vmem:[#allocation2 + $0xc8] sm:$0xff]  ;;  %v1553_v31 = vld [vmem:[#allocation2 + $0xc0] sm:$0xff]  ;;  %v304_v34 = vld [vmem:[%s1739_s14 + $0x10] sm:$0xff] }
  0x18   : > { %886 = vmatpush.bf16.msra.mxu3 %v1558_v11  ;;  %v312_v35 = vld [vmem:[%s1739_s14 + $0x50] sm:$0xff]  ;;  %v302_v36 = vld [vmem:[%s1739_s14] sm:$0xff]  ;;  %v305_v38 = vld [vmem:[%s1739_s14 + $0x18] sm:$0xff] }
  0x19   : > { %845 = vmatpush.bf16.msra.mxu0 %v1533_v12  ;;  %v310_v37 = vld [vmem:[%s1739_s14 + $0x40] sm:$0xff]  ;;  %v313_v39 = vld [vmem:[%s1739_s14 + $0x58] sm:$0xff]  ;;  %v303_v40 = vld [vmem:[%s1739_s14 + $0x8] sm:$0xff]  ;;  %v320_v44 = vpack.c.bf16 %v312_v35, %v304_v34 }
  0x1a   : > { %859 = vmatpush.bf16.msra.mxu1 %v1541_v13  ;;  %v311_v41 = vld [vmem:[%s1739_s14 + $0x48] sm:$0xff]  ;;  %v1584_v42 = vld [vmem:[#allocation2 + $0x1b8] sm:$0xff]  ;;  %v318_v45 = vpack.c.bf16 %v310_v37, %v302_v36  ;;  %v321_v46 = vpack.c.bf16 %v313_v39, %v305_v38  ;;  %v1567_v48 = vld [vmem:[#allocation2 + $0x130] sm:$0xff] }
  0x1b   : > { %873 = vmatpush.bf16.msra.mxu2 %v1549_v14  ;;  %v1592_v43 = vld [vmem:[#allocation2 + $0x1f8] sm:$0xff]  ;;  %v319_v47 = vpack.c.bf16 %v311_v41, %v303_v40  ;;  %v1575_v49 = vld [vmem:[#allocation2 + $0x170] sm:$0xff]  ;;  %v1566_v52 = vld [vmem:[#allocation2 + $0x128] sm:$0xff] }
  0x1c   : > { %887 = vmatpush.bf16.msra.mxu3 %v1557_v15  ;;  %v1583_v50 = vld [vmem:[#allocation2 + $0x1b0] sm:$0xff]  ;;  %v1574_v53 = vld [vmem:[#allocation2 + $0x168] sm:$0xff]  ;;  %v1565_v56 = vld [vmem:[#allocation2 + $0x120] sm:$0xff] }
  0x1d   : > { %846 = vmatpush.bf16.msra.mxu0 %v1532_v16  ;;  %v1591_v51 = vld [vmem:[#allocation2 + $0x1f0] sm:$0xff]  ;;  %v1582_v54 = vld [vmem:[#allocation2 + $0x1a8] sm:$0xff]  ;;  %v1573_v57 = vld [vmem:[#allocation2 + $0x160] sm:$0xff] }
  0x1e   : > { %860 = vmatpush.bf16.msra.mxu1 %v1540_v17  ;;  %v1590_v55 = vld [vmem:[#allocation2 + $0x1e8] sm:$0xff]  ;;  %v1581_v58 = vld [vmem:[#allocation2 + $0x1a0] sm:$0xff]  ;;  %v1564_v60 = vld [vmem:[#allocation2 + $0x118] sm:$0xff] }
  0x1f   : > { %874 = vmatpush.bf16.msra.mxu2 %v1548_v18  ;;  %v1589_v59 = vld [vmem:[#allocation2 + $0x1e0] sm:$0xff]  ;;  %v1572_v61 = vld [vmem:[#allocation2 + $0x158] sm:$0xff]  ;;  %v1563_v0 = vld [vmem:[#allocation2 + $0x110] sm:$0xff] }
  0x20   : > { %888 = vmatpush.bf16.msra.mxu3 %v1556_v19  ;;  %v1580_v62 = vld [vmem:[#allocation2 + $0x198] sm:$0xff]  ;;  %v1571_v1 = vld [vmem:[#allocation2 + $0x150] sm:$0xff]  ;;  %v1562_v4 = vld [vmem:[#allocation2 + $0x108] sm:$0xff] }
  0x21   : > { %847 = vmatpush.bf16.msra.mxu0 %v1531_v20  ;;  %v1588_v63 = vld [vmem:[#allocation2 + $0x1d8] sm:$0xff]  ;;  %v1579_v2 = vld [vmem:[#allocation2 + $0x190] sm:$0xff]  ;;  %v1570_v5 = vld [vmem:[#allocation2 + $0x148] sm:$0xff] }
  0x22   : > { %861 = vmatpush.bf16.msra.mxu1 %v1539_v21  ;;  %v1587_v3 = vld [vmem:[#allocation2 + $0x1d0] sm:$0xff]  ;;  %v1578_v6 = vld [vmem:[#allocation2 + $0x188] sm:$0xff]  ;;  %v1561_v8 = vld [vmem:[#allocation2 + $0x100] sm:$0xff] }
  0x23   : > { %875 = vmatpush.bf16.msra.mxu2 %v1547_v22  ;;  %v1586_v7 = vld [vmem:[#allocation2 + $0x1c8] sm:$0xff]  ;;  %v1569_v9 = vld [vmem:[#allocation2 + $0x140] sm:$0xff]  ;;  %v308_v16 = vld [vmem:[%s1739_s14 + $0x30] sm:$0xff] }
  0x24   : > { %889 = vmatpush.bf16.msra.mxu3 %v1555_v23  ;;  %v1577_v10 = vld [vmem:[#allocation2 + $0x180] sm:$0xff]  ;;  %v307_v14 = vld [vmem:[%s1739_s14 + $0x28] sm:$0xff]  ;;  %v316_v17 = vld [vmem:[%s1739_s14 + $0x70] sm:$0xff] }
  0x25   : > { %848 = vmatpush.bf16.msra.mxu0 %v1530_v24  ;;  %v1585_v11 = vld [vmem:[#allocation2 + $0x1c0] sm:$0xff]  ;;  %v315_v15 = vld [vmem:[%s1739_s14 + $0x68] sm:$0xff]  ;;  %v309_v18 = vld [vmem:[%s1739_s14 + $0x38] sm:$0xff]  ;;  %v324_v22 = vpack.c.bf16 %v316_v17, %v308_v16 }
  0x26   : > { %862 = vmatpush.bf16.msra.mxu1 %v1538_v25  ;;  %v306_v12 = vld [vmem:[%s1739_s14 + $0x20] sm:$0xff]  ;;  %v317_v19 = vld [vmem:[%s1739_s14 + $0x78] sm:$0xff]  ;;  %v323_v21 = vpack.c.bf16 %v315_v15, %v307_v14  ;;  %v1599_v25 = vld [vmem:[%s1824_s3 + $0x30] sm:$0xff] }
  0x27   : > { %876 = vmatpush.bf16.msra.mxu2 %v1546_v26  ;;  %v314_v13 = vld [vmem:[%s1739_s14 + $0x60] sm:$0xff]  ;;  %v325_v23 = vpack.c.bf16 %v317_v19, %v309_v18  ;;  %v1600_v24 = vld [vmem:[%s1824_s3 + $0x38] sm:$0xff]  ;;  %v1598_v26 = vld [vmem:[%s1824_s3 + $0x28] sm:$0xff]  ;;  %s300_s14 = scalar_lea.vmem %s1828_s7, %s1205_s8 }
  0x28   : > { %890 = vmatpush.bf16.msra.mxu3 %v1554_v27  ;;  %v322_v20 = vpack.c.bf16 %v314_v13, %v306_v12  ;;  %v1597_v27 = vld [vmem:[%s1824_s3 + $0x20] sm:$0xff]  ;;  %v1608_v39 = vld [vmem:[%s1826_s5 + $0x38] sm:$0xff]  ;;  %v1607_v40 = vld [vmem:[%s1826_s5 + $0x30] sm:$0xff] }
  0x29   : > { %849 = vmatpush.bf16.msra.mxu0 %v1529_v28  ;;  %v1596_v28 = vld [vmem:[%s1824_s3 + $0x18] sm:$0xff]  ;;  %v1630_v34 = vld [vmem:[%s1823_s2] ss:$0 sm:$0xff] }
  0x2a   : > { %863 = vmatpush.bf16.msra.mxu1 %v1537_v29  ;;  %v1595_v29 = vld [vmem:[%s1824_s3 + $0x10] sm:$0xff]  ;;  %v1631_v13 = vld [vmem:[%s1825_s4] ss:$0 sm:$0xff] }
  0x2b   : > { %877 = vmatpush.bf16.msra.mxu2 %v1545_v30 }
  0x2c   : > { %891 = vmatpush.bf16.msra.mxu3 %v1553_v31  ;;  %850 = vmatmul.bf16.vlgmr.msra.gmra.mxu0 %v318_v45  ;;  %v1594_v31 = vld [vmem:[%s1824_s3 + $0x8] sm:$0xff] }
  0x2d   : > { %898 = vmatpush.bf16.msrb.mxu0 %v1568_v32  ;;  %864 = vmatmul.bf16.vlgmr.msra.gmra.mxu1 %v319_v47 }
  0x2e   : > { %912 = vmatpush.bf16.msrb.mxu1 %v1576_v33  ;;  %878 = vmatmul.bf16.vlgmr.msra.gmra.mxu2 %v320_v44  ;;  %v1593_v33 = vld [vmem:[%s1824_s3] sm:$0xff]  ;;  %v1606_v44 = vld [vmem:[%s1826_s5 + $0x28] sm:$0xff] }
  0x2f   : > { %926 = vmatpush.bf16.msrb.mxu2 %v1584_v42  ;;  %892 = vmatmul.bf16.vlgmr.msra.gmra.mxu3 %v321_v46 }
  0x30   : > { %940 = vmatpush.bf16.msrb.mxu3 %v1592_v43 }
  0x31   : > { %899 = vmatpush.bf16.msrb.mxu0 %v1567_v48 }
  0x32   : > { %913 = vmatpush.bf16.msrb.mxu1 %v1575_v49 }
  0x33   : > { %927 = vmatpush.bf16.msrb.mxu2 %v1583_v50  ;;  %v1605_v50 = vld [vmem:[%s1826_s5 + $0x20] sm:$0xff] }
  0x34   : > { %941 = vmatpush.bf16.msrb.mxu3 %v1591_v51 }
  0x35   : > { %900 = vmatpush.bf16.msrb.mxu0 %v1566_v52 }
  0x36   : > { %914 = vmatpush.bf16.msrb.mxu1 %v1574_v53 }
  0x37   : > { %928 = vmatpush.bf16.msrb.mxu2 %v1582_v54 }
  0x38   : > { %942 = vmatpush.bf16.msrb.mxu3 %v1590_v55 }
  0x39   : > { %901 = vmatpush.bf16.msrb.mxu0 %v1565_v56 }
  0x3a   : > { %915 = vmatpush.bf16.msrb.mxu1 %v1573_v57 }
  0x3b   : > { %929 = vmatpush.bf16.msrb.mxu2 %v1581_v58 }
  0x3c   : > { %943 = vmatpush.bf16.msrb.mxu3 %v1589_v59 }
  0x3d   : > { %902 = vmatpush.bf16.msrb.mxu0 %v1564_v60 }
  0x3e   : > { %916 = vmatpush.bf16.msrb.mxu1 %v1572_v61 }
  0x3f   : > { %930 = vmatpush.bf16.msrb.mxu2 %v1580_v62 }
  0x40   : > { %944 = vmatpush.bf16.msrb.mxu3 %v1588_v63 }
  0x41   : > { %903 = vmatpush.bf16.msrb.mxu0 %v1563_v0 }
  0x42   : > { %917 = vmatpush.bf16.msrb.mxu1 %v1571_v1 }
  0x43   : > { %931 = vmatpush.bf16.msrb.mxu2 %v1579_v2 }
  0x44   : > { %945 = vmatpush.bf16.msrb.mxu3 %v1587_v3 }
  0x45   : > { %904 = vmatpush.bf16.msrb.mxu0 %v1562_v4 }
  0x46   : > { %918 = vmatpush.bf16.msrb.mxu1 %v1570_v5 }
  0x47   : > { %932 = vmatpush.bf16.msrb.mxu2 %v1578_v6 }
  0x48   : > { %946 = vmatpush.bf16.msrb.mxu3 %v1586_v7 }
  0x49   : > { %905 = vmatpush.bf16.msrb.mxu0 %v1561_v8  ;;  %v1604_v8 = vld [vmem:[%s1826_s5 + $0x18] sm:$0xff] }
  0x4a   : > { %919 = vmatpush.bf16.msrb.mxu1 %v1569_v9  ;;  %v1603_v9 = vld [vmem:[%s1826_s5 + $0x10] sm:$0xff] }
  0x4b   : > { %933 = vmatpush.bf16.msrb.mxu2 %v1577_v10  ;;  %v1602_v10 = vld [vmem:[%s1826_s5 + $0x8] sm:$0xff] }
  0x4c   : > { %947 = vmatpush.bf16.msrb.mxu3 %v1585_v11  ;;  %906 = vmatmul.bf16.vlgmr.msrb.gmra.mxu0 %v322_v20  ;;  %v1601_v11 = vld [vmem:[%s1826_s5] sm:$0xff] }
  0x4d   : > { %920 = vmatmul.bf16.vlgmr.msrb.gmra.mxu1 %v323_v21  ;;  %1025 = vmatpush.bf16.msra.mxu0 %v1600_v24  ;;  %v1632_v20 = vld [vmem:[%s1827_s6] ss:$0 sm:$0xff] }
  0x4e   : > { %934 = vmatmul.bf16.vlgmr.msrb.gmra.mxu2 %v324_v22  ;;  %1110 = vmatpush.bf16.msra.mxu1 %v1608_v39 }
  0x4f   : > { %948 = vmatmul.bf16.vlgmr.msrb.gmra.mxu3 %v325_v23 }
  0x51   : > { %1026 = vmatpush.bf16.msra.mxu0 %v1599_v25 }
  0x52   : > { %1111 = vmatpush.bf16.msra.mxu1 %v1607_v40 }
  0x55   : > { %1027 = vmatpush.bf16.msra.mxu0 %v1598_v26 }
  0x56   : > { %1112 = vmatpush.bf16.msra.mxu1 %v1606_v44 }
  0x59   : > { %1028 = vmatpush.bf16.msra.mxu0 %v1597_v27 }
  0x5a   : > { %1113 = vmatpush.bf16.msra.mxu1 %v1605_v50 }
  0x5d   : > { %1029 = vmatpush.bf16.msra.mxu0 %v1596_v28 }
  0x5e   : > { %1114 = vmatpush.bf16.msra.mxu1 %v1604_v8 }
  0x61   : > { %1030 = vmatpush.bf16.msra.mxu0 %v1595_v29 }
  0x62   : > { %1115 = vmatpush.bf16.msra.mxu1 %v1603_v9 }
  0x65   : > { %1031 = vmatpush.bf16.msra.mxu0 %v1594_v31 }
  0x66   : > { %1116 = vmatpush.bf16.msra.mxu1 %v1602_v10 }
  0x69   : > { %1032 = vmatpush.bf16.msra.mxu0 %v1593_v33 }
  0x6a   : > { %1117 = vmatpush.bf16.msra.mxu1 %v1601_v11 }
  0xa9   : > { %v851_v30 = vpop.f32.mrf.mxu0 }
  0xaa   : > { %v865_v32 = vpop.f32.mrf.mxu1  ;;  %v852_v37 = vadd.f32 %v1630_v34, %v851_v30 }
  0xac   : > { %v866_v42 = vadd.f32 %v865_v32, %v852_v37 }
  0xb1   : > { %v879_v35 = vpop.f32.mrf.mxu2  ;;  %v853_v38 = vpop.f32.mrf.mxu0 }
  0xb2   : > { %v893_v36 = vpop.f32.mrf.mxu3  ;;  %v867_v41 = vpop.f32.mrf.mxu1  ;;  %v854_v43 = vadd.f32 %v1630_v34, %v853_v38  ;;  %v880_v47 = vadd.f32 %v879_v35, %v866_v42 }
  0xb4   : > { %v868_v48 = vadd.f32 %v867_v41, %v854_v43  ;;  %v894_v52 = vadd.f32 %v893_v36, %v880_v47 }
  0xb9   : > { %v881_v45 = vpop.f32.mrf.mxu2 }
  0xba   : > { %v895_v46 = vpop.f32.mrf.mxu3  ;;  %v882_v53 = vadd.f32 %v881_v45, %v868_v48 }
  0xbc   : > { %v896_v57 = vadd.f32 %v895_v46, %v882_v53 }
  0xc9   : > { %v907_v49 = vpop.f32.mrf.mxu0 }
  0xca   : > { %v921_v51 = vpop.f32.mrf.mxu1  ;;  %v908_v54 = vadd.f32 %v907_v49, %v894_v52 }
  0xcc   : > { %v922_v59 = vadd.f32 %v921_v51, %v908_v54 }
  0xd1   : > { %v935_v55 = vpop.f32.mrf.mxu2  ;;  %v909_v58 = vpop.f32.mrf.mxu0 }
  0xd2   : > { %v949_v56 = vpop.f32.mrf.mxu3  ;;  %v910_v60 = vadd.f32 %v909_v58, %v896_v57  ;;  %v936_v61 = vadd.f32 %v935_v55, %v922_v59  ;;  %v923_v62 = vpop.f32.mrf.mxu1 }
  0xd4   : > { %v924_v63 = vadd.f32 %v923_v62, %v910_v60  ;;  %v950_v1 = vadd.f32 %v949_v56, %v936_v61 }
  0xd6   : > { %v954_v5 = vmax.f32 %v950_v1, 0.0 }
  0xd9   : > { %v937_v0 = vpop.f32.mrf.mxu2 }
  0xda   : > { %v938_v2 = vadd.f32 %v937_v0, %v924_v63  ;;  %v951_v3 = vpop.f32.mrf.mxu3 }
  0xdc   : > { %v952_v4 = vadd.f32 %v951_v3, %v938_v2 }
  0xde   : > { %v955_v6 = vmax.f32 %v952_v4, 0.0 }
  0xe0   : > { %v956_v7 = vpack.c.bf16 %v955_v6, %v954_v5 }
  0xe2   : > { %1033 = vmatmul.bf16.vlgmr.msra.gmra.mxu0 %v956_v7 }
 0x15f   : > { %v1034_v12 = vpop.f32.mrf.mxu0 }
 0x160   : > { %v1035_v14 = vadd.f32 %v1631_v13, %v1034_v12 }
 0x162   : > { %v1039_v17 = vmax.f32 %v1035_v14, 0.0 }
 0x167   : > { %v1036_v15 = vpop.f32.mrf.mxu0 }
 0x168   : > { %v1037_v16 = vadd.f32 %v1631_v13, %v1036_v15 }
 0x16a   : > { %v1040_v18 = vmax.f32 %v1037_v16, 0.0 }
 0x16c   : > { %v1041_v19 = vpack.c.bf16 %v1040_v18, %v1039_v17 }
 0x16e   : > { %1118 = vmatmul.bf16.vlgmr.msra.gmra.mxu1 %v1041_v19 }
 0x1eb   : > { %v1119_v21 = vpop.f32.mrf.mxu1 }
 0x1ec   : > { %v1120_v22 = vadd.f32 %v1632_v20, %v1119_v21 }
 0x1ee   : > { %1124 = vst [vmem:[%s300_s14] sm:$0xff] %v1120_v22 }
 0x1f3   : > { %v1121_v23 = vpop.f32.mrf.mxu1 }
 0x1f4   : > { %v1122_v24 = vadd.f32 %v1632_v20, %v1121_v23 }
 0x1f6   : > { %1125 = vst [vmem:[%s300_s14 + $0x8] sm:$0xff] %v1122_v24 }
 0x1f7 PF: > { %s18_s24 = sadd.s32 1, %s1673_s24  }
 0x1f8   : > { %p15_p7 = scmp.ge.s32.totalorder %s18_s24, 4  }
 0x1fa   :  { %17 = sbr.rel (!%p15_p7) target bundleno = 1 (0x1), region = 83 }
 0x1ff   :  { %1148 = vsyncpa [#allocation3], 1 }
 0x200   :  { %1150 = vsyncpa [#allocation3 + $0x1], 1 }

</bundles_post_ra>
